<compile_context>
chip_gen: v5e
topology: v5e:2x2
jax: 0.10.0
libtpu: 0.0.40
codegen_flags: <defaults>
</compile_context>

<pallas_src>
import jax
import jax.numpy as jnp
from jax.experimental import pallas as pl
from jax.experimental.pallas import tpu as pltpu


# ----------------------------------------------------------------------------
# Kernels
# ----------------------------------------------------------------------------
def _pool_normalize_kernel(emb_ref, mask_ref, norm_ref, acc_ref, cnt_ref):
    """Masked mean-pool + L2-normalize a block of chunks, streaming seq tiles.

    emb_ref:  [Bblk, TS, H]  token-embedding tile (native dtype, e.g. bf16)
    mask_ref: [Bblk, 1, TS]  matching attention-mask tile (same dtype)
    norm_ref: [Bblk, 1, H]   output: L2-normalized pooled embeddings (f32)
    acc_ref:  [Bblk, 1, H]   VMEM accumulator: sum_s mask * emb   (f32)
    cnt_ref:  [Bblk, 1, 1]   VMEM accumulator: sum_s mask         (f32)
    """
    s = pl.program_id(1)

    @pl.when(s == 0)
    def _init():
        acc_ref[...] = jnp.zeros_like(acc_ref)
        cnt_ref[...] = jnp.zeros_like(cnt_ref)

    # Masked sum over this sequence tile on the MXU, one skinny matmul per
    # chunk in the block (statically unrolled; Bblk == 1 for real hidden
    # sizes).  bf16 x bf16 operands, f32 accumulation.
    for bi in range(emb_ref.shape[0]):
        acc_ref[bi] += jnp.dot(mask_ref[bi], emb_ref[bi],
                               preferred_element_type=jnp.float32)
    cnt_ref[...] += jnp.sum(mask_ref[...].astype(jnp.float32),
                            axis=2, keepdims=True)

    @pl.when(s == pl.num_programs(1) - 1)
    def _finalize():
        # torch: sum / clamp(mask_sum, min=1e-9)
        denom = jnp.maximum(cnt_ref[...], 1e-9)                       # [Bblk,1,1]
        pooled = acc_ref[...] * pl.reciprocal(denom, approx=False)    # [Bblk,1,H]
        # torch F.normalize(p=2, dim=1, eps=1e-12): x / max(||x||, eps)
        sq = jnp.sum(pooled * pooled, axis=2, keepdims=True)          # [Bblk,1,1]
        inv_norm = jax.lax.rsqrt(jnp.maximum(sq, 1e-24))              # EUP rsqrt
        norm_ref[...] = pooled * inv_norm


def _projection_kernel(rep_ref, w_ref, b_ref, out_ref):
    """scores tile = rep @ W[:, tile] + bias[tile]  (pure weight-streaming GEMV).

    rep_ref: [1, H]    batch representation (already chunk-averaged, weight dtype)
    w_ref:   [H, TU]   linear weight tile (pre-transposed, native dtype)
    b_ref:   [1, TU]   bias tile (f32)
    out_ref: [1, TU]   gating-score tile (f32)
    """
    out_ref[...] = (jnp.dot(rep_ref[...], w_ref[...],
                            preferred_element_type=jnp.float32)
                    + b_ref[...])


# ----------------------------------------------------------------------------
# Generation-aware VMEM / tile sizing helpers
# ----------------------------------------------------------------------------
def _physical_vmem_bytes():
    """Physical VMEM of the current TPU generation (v5e/v6e: 128 MiB, v7x: 64 MiB)."""
    try:
        v = int(getattr(pltpu.get_tpu_info(), "vmem_capacity_bytes"))
        if v > 0:
            return v
    except Exception:
        pass
    return 64 << 20  # conservative: assume v7x-class 64 MiB per TensorCore


def _tile_budget_bytes():
    """Per-buffer tile budget: big tiles on 128 MiB parts, modest on v7x."""
    return (24 << 20) if _physical_vmem_bytes() >= (100 << 20) else (10 << 20)


def _vmem_limit_bytes(*byte_counts, floor=4 << 20):
    """Scoped VMEM limit: 2x headroom over the live buffers, capped at 75% of
    physical VMEM so Mosaic keeps room for internal scratch (<= ~48 MiB on v7x)."""
    ceil = (_physical_vmem_bytes() * 3) // 4
    need = 2 * int(sum(byte_counts))
    return int(max(floor, min(ceil, need)))


def _pick_batch_block(num_chunks, hidden):
    """How many batch chunks to pack per pooling grid step.

    Real hidden sizes (>=128) keep one chunk per step so the chunk axis stays
    the parallel (megacore) axis.  Small H packs chunks for dense DMAs and
    fewer ~0.35us grid steps."""
    if hidden >= 128:
        return 1
    best = 1
    for d in range(1, num_chunks + 1):
        if num_chunks % d == 0 and d * hidden <= 1024 and d <= 16:
            best = d
    return best


def _pick_seq_tile(seq_len, row_bytes, budget_bytes):
    """Largest TS that divides S, is lane-legal (multiple of 128 or == S) and
    keeps one [Bblk, TS, H] tile under budget_bytes."""
    cap = max(1, budget_bytes // max(1, row_bytes))
    legal = [d for d in range(1, seq_len + 1)
             if seq_len % d == 0 and (d % 128 == 0 or d == seq_len)]
    fitting = [d for d in legal if d <= cap]
    return max(fitting) if fitting else min(legal)


def _pick_uid_tile(num_uids, col_bytes, budget_bytes):
    """Largest legal TU under budget, preferring >= 2 blocks so both v7x
    TensorCores are fed on the parallel uid axis."""
    cap = max(1, budget_bytes // max(1, col_bytes))
    legal = [d for d in range(1, num_uids + 1)
             if num_uids % d == 0 and (d % 128 == 0 or d == num_uids)]
    fitting = [d for d in legal if d <= cap]
    if not fitting:
        return min(legal)
    multi = [d for d in fitting if num_uids // d >= 2]
    return max(multi) if multi else max(fitting)


# ----------------------------------------------------------------------------
# Wrappers
# ----------------------------------------------------------------------------
def masked_pool_normalize(token_embeddings, attention_mask, *, seq_tile=None,
                          batch_block=None):
    """Masked mean-pool over the sequence + per-chunk L2 normalization.

    token_embeddings: [B, S, H] (native dtype, bf16 recommended);
    attention_mask:   [B, S]    ->  [B, 1, H] float32.
    """
    B, S, H = token_embeddings.shape
    emb = token_embeddings                       # no upcast: stream native bytes
    mask3 = attention_mask.reshape(B, 1, S).astype(emb.dtype)   # 0/1, exact in bf16
    ebytes = emb.dtype.itemsize

    bblk = batch_block if batch_block is not None else _pick_batch_block(B, H)
    if B % bblk != 0:
        raise ValueError(f"batch_block={bblk} must divide B={B}.")

    budget = _tile_budget_bytes()
    ts = seq_tile if seq_tile is not None else _pick_seq_tile(S, bblk * H * ebytes, budget)
    if S % ts != 0 or not (ts % 128 == 0 or ts == S):
        raise ValueError(f"seq_tile={ts} must divide S={S} and be a multiple of 128 (or == S).")

    vmem_bytes = _vmem_limit_bytes(
        2 * bblk * ts * H * ebytes,      # double-buffered embedding tiles
        2 * bblk * ts * ebytes,          # double-buffered mask tiles
        2 * bblk * H * 4,                # double-buffered output tiles
        bblk * H * 4 + bblk * 4)         # f32 accumulators

    cost = pl.CostEstimate(
        flops=2 * B * S * H + 6 * B * H,
        transcendentals=2 * B,
        bytes_accessed=ebytes * (B * S * H + B * S) + 4 * B * H)

    return pl.pallas_call(
        _pool_normalize_kernel,
        out_shape=jax.ShapeDtypeStruct((B, 1, H), jnp.float32),
        grid_spec=pltpu.PrefetchScalarGridSpec(
            num_scalar_prefetch=0,
            grid=(B // bblk, S // ts),
            in_specs=[
                pl.BlockSpec((bblk, ts, H), lambda b, s: (b, s, 0)),
                pl.BlockSpec((bblk, 1, ts), lambda b, s: (b, 0, s)),
            ],
            out_specs=pl.BlockSpec((bblk, 1, H), lambda b, s: (b, 0, 0)),
            scratch_shapes=[
                pltpu.VMEM((bblk, 1, H), jnp.float32),   # masked-sum accumulator
                pltpu.VMEM((bblk, 1, 1), jnp.float32),   # valid-token counter
            ]),
        compiler_params=pltpu.CompilerParams(
            dimension_semantics=("parallel", "arbitrary"),
            vmem_limit_bytes=vmem_bytes),
        cost_estimate=cost,
    )(emb, mask3)


def gating_projection(normalized, weight_t, bias, *, uid_tile=None):
    """scores = mean_b(normalized) @ weight_t + bias.

    normalized: [B, 1, H] f32; weight_t: [H, U] (torch weight.T, native dtype);
    bias: [U].  The chunk-mean is hoisted here (tiny op) so the kernel only
    streams the [H, U] weight.
    """
    B, _, H = normalized.shape
    Hw, U = weight_t.shape
    assert Hw == H, "weight_t must be [hidden, num_uids]"
    wbytes = weight_t.dtype.itemsize

    # Hoisted chunk-mean; cast to the weight dtype for a single-pass MXU matmul.
    rep = jnp.mean(normalized.astype(jnp.float32), axis=0).astype(weight_t.dtype)  # [1, H]
    bias2 = bias.astype(jnp.float32).reshape(1, U)

    budget = _tile_budget_bytes()
    tu = uid_tile if uid_tile is not None else _pick_uid_tile(U, H * wbytes, budget)
    if U % tu != 0 or not (tu % 128 == 0 or tu == U):
        raise ValueError(f"uid_tile={tu} must divide U={U} and be a multiple of 128 (or == U).")

    vmem_bytes = _vmem_limit_bytes(
        2 * H * tu * wbytes,             # double-buffered weight tiles
        2 * tu * 4, 2 * tu * 4,          # bias / output tiles
        H * max(wbytes, 4))              # rep operand

    cost = pl.CostEstimate(
        flops=2 * H * U + U,
        transcendentals=0,
        bytes_accessed=wbytes * (H * U + H) + 4 * 2 * U)

    # NOTE: further weight-stream reduction (int8 on v5e/v6e, fp8 on v7x) is
    # possible but not implemented to keep the reference semantics exact.
    out = pl.pallas_call(
        _projection_kernel,
        out_shape=jax.ShapeDtypeStruct((1, U), jnp.float32),
        grid_spec=pltpu.PrefetchScalarGridSpec(
            num_scalar_prefetch=0,
            grid=(U // tu,),
            in_specs=[
                pl.BlockSpec((1, H), lambda u: (0, 0)),
                pl.BlockSpec((H, tu), lambda u: (0, u)),
                pl.BlockSpec((1, tu), lambda u: (0, u)),
            ],
            out_specs=pl.BlockSpec((1, tu), lambda u: (0, u))),
        compiler_params=pltpu.CompilerParams(
            dimension_semantics=("parallel",),
            vmem_limit_bytes=vmem_bytes),
        cost_estimate=cost,
    )(rep, weight_t, bias2)
    return out[0]  # [U]


def sentence_embed_gating_forward(token_embeddings, attention_mask, weight_t, bias,
                                  *, seq_tile=None, uid_tile=None, batch_block=None):
    """Pallas implementation of SentenceEmbedGatingModel.forward after the encoder.

    token_embeddings: [B, S, H]  transformer token embeddings (model_output[0])
    attention_mask:   [B, S]     tokenizer attention mask
    weight_t:         [H, U]     self.linear.weight.T
    bias:             [U]        self.linear.bias
    returns:          [U]        gating scores (f32)
    """
    # TODO(synk): the AutoTokenizer + pretrained AutoModel transformer encoder
    # have no Pallas equivalent; this consumes their outputs directly.
    normalized = masked_pool_normalize(token_embeddings, attention_mask,
                                       seq_tile=seq_tile, batch_block=batch_block)
    return gating_projection(normalized, weight_t, bias, uid_tile=uid_tile)


# ----------------------------------------------------------------------------
# Demo / correctness check
# ----------------------------------------------------------------------------
if __name__ == "__main__":
    # Small shapes consistent with the module's forward:
    #   B = number of (overflowing) token chunks, S = sequence length,
    #   H = transformer hidden size, U = num_uids.
    # seq_tile=128 / uid_tile=128 so both grids take multiple steps.
    B, S, H, U = 2, 256, 32, 256

    key = jax.random.PRNGKey(0)
    k_emb, k_w, k_b = jax.random.split(key, 3)

    # Simulated transformer output, streamed in its native bf16.
    token_embeddings = jax.random.normal(k_emb, (B, S, H), jnp.float32).astype(jnp.bfloat16)
    # Attention mask with padding on the tail of the second chunk.
    pos = jnp.arange(S)
    attention_mask = jnp.stack(
        [jnp.ones((S,), jnp.float32), (pos < S - 40).astype(jnp.float32)], axis=0)

    # Deterministic Linear(H, U) init, PyTorch-style uniform(-1/sqrt(H), 1/sqrt(H)).
    bound = 1.0 / (H ** 0.5)
    weight = jax.random.uniform(k_w, (U, H), minval=-bound, maxval=bound,
                                dtype=jnp.float32)             # torch layout [out, in]
    bias = jax.random.uniform(k_b, (U,), minval=-bound, maxval=bound,
                              dtype=jnp.float32)
    weight_t = weight.T.astype(jnp.bfloat16)                    # [H, U] bf16 weight stream

    scores = sentence_embed_gating_forward(token_embeddings, attention_mask,
                                           weight_t, bias,
                                           seq_tile=128, uid_tile=128)
    scores = jax.block_until_ready(scores)

    # Pure-JAX f32 reference on the same (bf16) data.
    emb_f32 = token_embeddings.astype(jnp.float32)
    w_t_f32 = weight_t.astype(jnp.float32)
    m = attention_mask[:, :, None]
    pooled = (jnp.sum(emb_f32 * m, axis=1)
              / jnp.maximum(jnp.sum(m, axis=1), 1e-9))
    normed = pooled / jnp.maximum(
        jnp.sqrt(jnp.sum(pooled * pooled, axis=1, keepdims=True)), 1e-12)
    batch_rep = jnp.mean(normed, axis=0)
    ref = batch_rep @ w_t_f32 + bias

    assert scores.shape == (U,)
    max_err = float(jnp.max(jnp.abs(scores - ref)))
    # bf16 operands with f32 accumulation in-kernel vs an all-f32 reference:
    # tolerance loose enough for bf16 rounding, tight enough to catch real bugs.
    assert jnp.allclose(scores, ref, atol=1e-2, rtol=1e-2), max_err
    print("KERNEL_OK")
</pallas_src>

<mosaic_0001>
module attributes {stable_mosaic.version = 11 : i64} {
  func.func @_pool_normalize_kernel(%arg0: i32, %arg1: i32, %arg2: memref<2x128x32xbf16, #tpu.memory_space<vmem>>, %arg3: memref<2x1x128xbf16, #tpu.memory_space<vmem>>, %arg4: memref<2x1x32xf32, #tpu.memory_space<vmem>>, %arg5: memref<2x1x32xf32, #tpu.memory_space<vmem>>, %arg6: memref<2x1x1xf32, #tpu.memory_space<vmem>>) attributes {dimension_semantics = [#tpu.dimension_semantics<parallel>, #tpu.dimension_semantics<arbitrary>], iteration_bounds = array<i64: 1, 2>, scalar_prefetch = 0 : i64, scratch_operands = 2 : i64, tpu.core_type = #tpu.core_type<tc>, window_params = [{transform_indices = @transform_0, window_bounds = array<i64: 2, 128, 32>}, {transform_indices = @transform_1, window_bounds = array<i64: 2, 1, 128>}, {transform_indices = @transform_2, window_bounds = array<i64: 2, 1, 32>}]} {
    %c0_i32 = arith.constant 0 : i32
    %0 = arith.cmpi eq, %arg1, %c0_i32 : i32
    %1 = arith.extui %0 : i1 to i32
    %c0_i32_0 = arith.constant 0 : i32
    %2 = arith.cmpi ne, %1, %c0_i32_0 : i32
    scf.if %2 {
      %cst_35 = arith.constant 0.000000e+00 : f32
      %35 = vector.broadcast %cst_35 : f32 to vector<2x1x32xf32>
      %c0_36 = arith.constant 0 : index
      %c0_37 = arith.constant 0 : index
      %c0_38 = arith.constant 0 : index
      %36 = vector.load %arg5[%c0_36, %c0_37, %c0_38] : memref<2x1x32xf32, #tpu.memory_space<vmem>>, vector<2x1x32xf32>
      tpu.vector_store %arg5[%c0_36, %c0_37, %c0_38], %35 {strides = array<i32>} : memref<2x1x32xf32, #tpu.memory_space<vmem>>, vector<2x1x32xf32>,
      %cst_39 = arith.constant 0.000000e+00 : f32
      %37 = vector.broadcast %cst_39 : f32 to vector<2x1x1xf32>
      %c0_40 = arith.constant 0 : index
      %c0_41 = arith.constant 0 : index
      %c0_42 = arith.constant 0 : index
      %38 = vector.load %arg6[%c0_40, %c0_41, %c0_42] : memref<2x1x1xf32, #tpu.memory_space<vmem>>, vector<2x1x1xf32>
      tpu.vector_store %arg6[%c0_40, %c0_41, %c0_42], %37 {strides = array<i32>} : memref<2x1x1xf32, #tpu.memory_space<vmem>>, vector<2x1x1xf32>,
    } else {
    }
    %c0 = arith.constant 0 : index
    %c0_1 = arith.constant 0 : index
    %c0_2 = arith.constant 0 : index
    %3 = vector.load %arg5[%c0, %c0_1, %c0_2] : memref<2x1x32xf32, #tpu.memory_space<vmem>>, vector<1x1x32xf32>
    %4 = vector.shape_cast %3 : vector<1x1x32xf32> to vector<1x32xf32>
    %c0_3 = arith.constant 0 : index
    %c0_4 = arith.constant 0 : index
    %c0_5 = arith.constant 0 : index
    %5 = vector.load %arg3[%c0_3, %c0_4, %c0_5] : memref<2x1x128xbf16, #tpu.memory_space<vmem>>, vector<1x1x128xbf16>
    %6 = vector.shape_cast %5 : vector<1x1x128xbf16> to vector<1x128xbf16>
    %c0_6 = arith.constant 0 : index
    %c0_7 = arith.constant 0 : index
    %c0_8 = arith.constant 0 : index
    %7 = vector.load %arg2[%c0_6, %c0_7, %c0_8] : memref<2x128x32xbf16, #tpu.memory_space<vmem>>, vector<1x128x32xbf16>
    %8 = vector.shape_cast %7 : vector<1x128x32xbf16> to vector<128x32xbf16>
    %cst = arith.constant dense<0.000000e+00> : vector<1x32xf32>
    %9 = tpu.matmul %6, %8, %cst {dimension_numbers = #tpu.dot_dimension_numbers<[1], [0], [0], [1], [0, 0, 1, 1], [], []>} : vector<1x128xbf16>, vector<128x32xbf16>, vector<1x32xf32> -> vector<1x32xf32>
    %10 = arith.addf %4, %9 : vector<1x32xf32>
    %c0_9 = arith.constant 0 : index
    %c0_10 = arith.constant 0 : index
    %c0_11 = arith.constant 0 : index
    %11 = vector.load %arg5[%c0_9, %c0_10, %c0_11] : memref<2x1x32xf32, #tpu.memory_space<vmem>>, vector<1x1x32xf32>
    %12 = vector.shape_cast %11 : vector<1x1x32xf32> to vector<1x32xf32>
    %13 = vector.shape_cast %10 : vector<1x32xf32> to vector<1x1x32xf32>
    tpu.vector_store %arg5[%c0_9, %c0_10, %c0_11], %13 {strides = array<i32>} : memref<2x1x32xf32, #tpu.memory_space<vmem>>, vector<1x1x32xf32>,
    %c1 = arith.constant 1 : index
    %c0_12 = arith.constant 0 : index
    %c0_13 = arith.constant 0 : index
    %14 = vector.load %arg5[%c1, %c0_12, %c0_13] : memref<2x1x32xf32, #tpu.memory_space<vmem>>, vector<1x1x32xf32>
    %15 = vector.shape_cast %14 : vector<1x1x32xf32> to vector<1x32xf32>
    %c1_14 = arith.constant 1 : index
    %c0_15 = arith.constant 0 : index
    %c0_16 = arith.constant 0 : index
    %16 = vector.load %arg3[%c1_14, %c0_15, %c0_16] : memref<2x1x128xbf16, #tpu.memory_space<vmem>>, vector<1x1x128xbf16>
    %17 = vector.shape_cast %16 : vector<1x1x128xbf16> to vector<1x128xbf16>
    %c1_17 = arith.constant 1 : index
    %c0_18 = arith.constant 0 : index
    %c0_19 = arith.constant 0 : index
    %18 = vector.load %arg2[%c1_17, %c0_18, %c0_19] : memref<2x128x32xbf16, #tpu.memory_space<vmem>>, vector<1x128x32xbf16>
    %19 = vector.shape_cast %18 : vector<1x128x32xbf16> to vector<128x32xbf16>
    %cst_20 = arith.constant dense<0.000000e+00> : vector<1x32xf32>
    %20 = tpu.matmul %17, %19, %cst_20 {dimension_numbers = #tpu.dot_dimension_numbers<[1], [0], [0], [1], [0, 0, 1, 1], [], []>} : vector<1x128xbf16>, vector<128x32xbf16>, vector<1x32xf32> -> vector<1x32xf32>
    %21 = arith.addf %15, %20 : vector<1x32xf32>
    %c1_21 = arith.constant 1 : index
    %c0_22 = arith.constant 0 : index
    %c0_23 = arith.constant 0 : index
    %22 = vector.load %arg5[%c1_21, %c0_22, %c0_23] : memref<2x1x32xf32, #tpu.memory_space<vmem>>, vector<1x1x32xf32>
    %23 = vector.shape_cast %22 : vector<1x1x32xf32> to vector<1x32xf32>
    %24 = vector.shape_cast %21 : vector<1x32xf32> to vector<1x1x32xf32>
    tpu.vector_store %arg5[%c1_21, %c0_22, %c0_23], %24 {strides = array<i32>} : memref<2x1x32xf32, #tpu.memory_space<vmem>>, vector<1x1x32xf32>,
    %c0_24 = arith.constant 0 : index
    %c0_25 = arith.constant 0 : index
    %c0_26 = arith.constant 0 : index
    %25 = vector.load %arg6[%c0_24, %c0_25, %c0_26] : memref<2x1x1xf32, #tpu.memory_space<vmem>>, vector<2x1x1xf32>
    %c0_27 = arith.constant 0 : index
    %c0_28 = arith.constant 0 : index
    %c0_29 = arith.constant 0 : index
    %26 = vector.load %arg3[%c0_27, %c0_28, %c0_29] : memref<2x1x128xbf16, #tpu.memory_space<vmem>>, vector<2x1x128xbf16>
    %27 = arith.extf %26 : vector<2x1x128xbf16> to vector<2x1x128xf32>
    %cst_30 = arith.constant dense<0.000000e+00> : vector<2x1xf32>
    %28 = vector.multi_reduction <add>, %27, %cst_30 [2] : vector<2x1x128xf32> to vector<2x1xf32>
    %29 = vector.shape_cast %28 : vector<2x1xf32> to vector<2x1x1xf32>
    %30 = arith.addf %25, %29 : vector<2x1x1xf32>
    %c0_31 = arith.constant 0 : index
    %c0_32 = arith.constant 0 : index
    %c0_33 = arith.constant 0 : index
    %31 = vector.load %arg6[%c0_31, %c0_32, %c0_33] : memref<2x1x1xf32, #tpu.memory_space<vmem>>, vector<2x1x1xf32>
    tpu.vector_store %arg6[%c0_31, %c0_32, %c0_33], %30 {strides = array<i32>} : memref<2x1x1xf32, #tpu.memory_space<vmem>>, vector<2x1x1xf32>,
    %c1_i32 = arith.constant 1 : i32
    %32 = arith.cmpi eq, %arg1, %c1_i32 : i32
    %33 = arith.extui %32 : i1 to i32
    %c0_i32_34 = arith.constant 0 : i32
    %34 = arith.cmpi ne, %33, %c0_i32_34 : i32
    scf.if %34 {
      %c0_35 = arith.constant 0 : index
      %c0_36 = arith.constant 0 : index
      %c0_37 = arith.constant 0 : index
      %35 = vector.load %arg6[%c0_35, %c0_36, %c0_37] : memref<2x1x1xf32, #tpu.memory_space<vmem>>, vector<2x1x1xf32>
      %cst_38 = arith.constant 9.99999971E-10 : f32
      %36 = vector.broadcast %cst_38 : f32 to vector<2x1x1xf32>
      %37 = arith.maximumf %35, %36 : vector<2x1x1xf32>
      %c0_39 = arith.constant 0 : index
      %c0_40 = arith.constant 0 : index
      %c0_41 = arith.constant 0 : index
      %38 = vector.load %arg5[%c0_39, %c0_40, %c0_41] : memref<2x1x32xf32, #tpu.memory_space<vmem>>, vector<2x1x32xf32>
      %39 = tpu.reciprocal %37 : vector<2x1x1xf32> -> vector<2x1x1xf32>
      %40 = vector.broadcast %39 : vector<2x1x1xf32> to vector<2x1x32xf32>
      %41 = arith.mulf %38, %40 : vector<2x1x32xf32>
      %42 = arith.mulf %41, %41 : vector<2x1x32xf32>
      %cst_42 = arith.constant dense<0.000000e+00> : vector<2x1xf32>
      %43 = vector.multi_reduction <add>, %42, %cst_42 [2] : vector<2x1x32xf32> to vector<2x1xf32>
      %44 = vector.shape_cast %43 : vector<2x1xf32> to vector<2x1x1xf32>
      %cst_43 = arith.constant 1.000000e-24 : f32
      %45 = vector.broadcast %cst_43 : f32 to vector<2x1x1xf32>
      %46 = arith.maximumf %44, %45 : vector<2x1x1xf32>
      %47 = math.rsqrt %46 : vector<2x1x1xf32>
      %48 = vector.broadcast %47 : vector<2x1x1xf32> to vector<2x1x32xf32>
      %49 = arith.mulf %41, %48 : vector<2x1x32xf32>
      %c0_44 = arith.constant 0 : index
      %c0_45 = arith.constant 0 : index
      %c0_46 = arith.constant 0 : index
      %50 = vector.load %arg4[%c0_44, %c0_45, %c0_46] : memref<2x1x32xf32, #tpu.memory_space<vmem>>, vector<2x1x32xf32>
      tpu.vector_store %arg4[%c0_44, %c0_45, %c0_46], %49 {strides = array<i32>} : memref<2x1x32xf32, #tpu.memory_space<vmem>>, vector<2x1x32xf32>,
    } else {
    }
    return
  }
  func.func @transform_0(%arg0: i32, %arg1: i32) -> (i32, i32, i32) {
    %c0_i32 = arith.constant 0 : i32
    %c0_i32_0 = arith.constant 0 : i32
    return %arg0, %arg1, %c0_i32 : i32, i32, i32
  }
  func.func @transform_1(%arg0: i32, %arg1: i32) -> (i32, i32, i32) {
    %c0_i32 = arith.constant 0 : i32
    %c0_i32_0 = arith.constant 0 : i32
    return %arg0, %c0_i32, %arg1 : i32, i32, i32
  }
  func.func @transform_2(%arg0: i32, %arg1: i32) -> (i32, i32, i32) {
    %c0_i32 = arith.constant 0 : i32
    %c0_i32_0 = arith.constant 0 : i32
    %c0_i32_1 = arith.constant 0 : i32
    return %arg0, %c0_i32, %c0_i32_0 : i32, i32, i32
  }
}

</mosaic_0001>

<bundles_post_ra>
// kernel: tpu_custom_call.1
= control target key start
LH: loop header
LB: loop body
LE: loop exit
PB: predicated region body
PF: predicated region fallthrough
CT: control target
= control target key end

     0   :  { %7 = vsyncpa [#allocation7], 0  ;;  %s1024_s9 = smov 0   ;;  %s1026_s10 = smov 0   ;;  %s1154_s0 = inlined_call_operand.vmem [shape: bf16[2,256,32], index: 0, kind: input, shape index: {}]   ;;  %s1155_s1 = inlined_call_operand.vmem [shape: bf16[2,1,256], index: 1, kind: input, shape index: {}]   ;;  %s1156_s2 = inlined_call_operand.hbm [shape: f32[2,1,32], index: 2, kind: output, shape index: {}]  }
   0x1   :  { %s1028_s11 = smov 0   ;;  %s1030_s12 = smov 0  }
   0x2   :  { %s1032_s13 = smov 0  }
   0x3 LB: > { %s758_s14 = sadd.s32 4294967295, %s1002_s13   ;;  %s22_s15 = sadd.s32 1, %s998_s12  ;;  %s1002_s13 = sphi %s1032_s13, %s13_s13   ;;  %s998_s12 = sphi %s1030_s12, %s1161_s12   ;;  %s994_s11 = sphi %s1028_s11, %s1160_s11   ;;  %s990_s10 = sphi %s1026_s10, %s1159_s10   ;;  %s986_s9 = sphi %s1024_s9, %s1158_s9  }
   0x4   : > { %p23_p0 = scmp.ge.s32.totalorder %s22_s15, 2  ;;  %p41_p1 = scmp.ne.s32.totalorder %s990_s10, %s986_s9 }
   0x5   : > { %p42_p2 = scmp.eq.s32.totalorder %s1002_s13, 0  ;;  %s34_s18 = sadd.s32 1, %s990_s10 }
   0x6   : > { %s1163_s15 = smov (%p23_p0, %s22_s15), 0  ;;  %p760_p5 = scmp.ge.s32.totalorder %s1002_s13, 2 }
   0x7   : > { %p1056_p3 = por %p42_p2, %p41_p1  ;;  %s30_s17 = ssub.s32 %s998_s12, %s1163_s15 }
   0x8   : > { %p32_p4 = scmp.eq.s32.totalorder %s30_s17, 0  ;;  %121 = sbr.rel (%p760_p5) target bundleno = 38 (0x26), region = 16 }
   0xa   : > { %s1064_s19 = scalar_select %p32_p4, %s990_s10, %s34_s18  }
   0xd   : > { %124 = sbr.rel (!%p1056_p3) target bundleno = 33 (0x21), region = 20  ;;  %s126_s20 = sand.u32 (%p1056_p3), 1, %s990_s10  }
   0xe   : > { %s855_s21 = sshll.u32 (%p1056_p3), %s998_s12, 6  ;;  %s761_s22 = sshll.u32 (%p1056_p3), %s126_s20, 7 }
   0xf   : > { %s1074_s25 = scalar_lea.vmem (%p1056_p3), %s1154_s0, %s855_s21  ;;  %s128_s26 = scalar_lea.vmem (%p1056_p3), [#allocation4], %s761_s22 }
  0x10   : > { %v151_v0 = vld [vmem:[%s1074_s25] sm:$0xff] (%p1056_p3)   ;;  %v155_v1 = vld [vmem:[%s1074_s25 + $0x8] sm:$0xff] (%p1056_p3)   ;;  %v159_v2 = vld [vmem:[%s1074_s25 + $0x10] sm:$0xff] (%p1056_p3)  }
  0x11   : > { %152 = vst [vmem:[%s128_s26] sm:$0xff] (%p1056_p3), %v151_v0   ;;  %v163_v3 = vld [vmem:[%s1074_s25 + $0x18] sm:$0xff] (%p1056_p3)   ;;  %v167_v4 = vld [vmem:[%s1074_s25 + $0x20] sm:$0xff] (%p1056_p3)   ;;  %v171_v5 = vld [vmem:[%s1074_s25 + $0x28] sm:$0xff] (%p1056_p3)  }
  0x12   : > { %156 = vst [vmem:[%s128_s26 + $0x8] sm:$0xff] %v155_v1   ;;  %v175_v6 = vld [vmem:[%s1074_s25 + $0x30] sm:$0xff]   ;;  %v179_v7 = vld [vmem:[%s1074_s25 + $0x38] sm:$0xff]   ;;  %v183_v8 = vld [vmem:[%s1074_s25 + $0x80] sm:$0xff]  }
  0x13   : > { %160 = vst [vmem:[%s128_s26 + $0x10] sm:$0xff] %v159_v2   ;;  %v187_v9 = vld [vmem:[%s1074_s25 + $0x88] sm:$0xff]   ;;  %v191_v10 = vld [vmem:[%s1074_s25 + $0x90] sm:$0xff]   ;;  %v195_v11 = vld [vmem:[%s1074_s25 + $0x98] sm:$0xff]  }
  0x14   : > { %164 = vst [vmem:[%s128_s26 + $0x18] sm:$0xff] %v163_v3   ;;  %v199_v12 = vld [vmem:[%s1074_s25 + $0xa0] sm:$0xff]   ;;  %v203_v13 = vld [vmem:[%s1074_s25 + $0xa8] sm:$0xff]   ;;  %v207_v14 = vld [vmem:[%s1074_s25 + $0xb0] sm:$0xff]  }
  0x15   : > { %168 = vst [vmem:[%s128_s26 + $0x20] sm:$0xff] %v167_v4   ;;  %v211_v15 = vld [vmem:[%s1074_s25 + $0xb8] sm:$0xff]  }
  0x16   : > { %172 = vst [vmem:[%s128_s26 + $0x28] sm:$0xff] %v171_v5  }
  0x17   : > { %176 = vst [vmem:[%s128_s26 + $0x30] sm:$0xff] %v175_v6  }
  0x18   : > { %180 = vst [vmem:[%s128_s26 + $0x38] sm:$0xff] %v179_v7  }
  0x19   : > { %184 = vst [vmem:[%s128_s26 + $0x40] sm:$0xff] %v183_v8  }
  0x1a   : > { %188 = vst [vmem:[%s128_s26 + $0x48] sm:$0xff] %v187_v9  }
  0x1b   : > { %192 = vst [vmem:[%s128_s26 + $0x50] sm:$0xff] %v191_v10  }
  0x1c   : > { %196 = vst [vmem:[%s128_s26 + $0x58] sm:$0xff] %v195_v11  }
  0x1d   : > { %200 = vst [vmem:[%s128_s26 + $0x60] sm:$0xff] %v199_v12  }
  0x1e   : > { %204 = vst [vmem:[%s128_s26 + $0x68] sm:$0xff] %v203_v13  }
  0x1f   : > { %208 = vst [vmem:[%s128_s26 + $0x70] sm:$0xff] %v207_v14  }
  0x20   : > { %212 = vst [vmem:[%s128_s26 + $0x78] sm:$0xff] %v211_v15  }
  0x21 PF: > { %302 = sbr.rel (!%p1056_p3) target bundleno = 38 (0x26), region = 61  ;;  %s304_s27 = sand.u32 (%p1056_p3), 1, %s990_s10  }
  0x22   : > { %s310_s30 = scalar_lea.vmem (%p1056_p3), %s1155_s1, %s998_s12  ;;  %s764_s3 = sshll.u32 (%p1056_p3), %s304_s27, 1 }
  0x23   : > { %v327_v16 = vld [vmem:[%s310_s30] sm:$0x1] (%p1056_p3)  ;;  %v329_v17 = vld [vmem:[%s310_s30 + $0x2] sm:$0x1] (%p1056_p3)  ;;  %s306_s4 = scalar_lea.vmem (%p1056_p3), [#allocation5], %s764_s3 }
  0x24   : > { %328 = vst [vmem:[%s306_s4] sm:$0x1] (%p1056_p3), %v327_v16 }
  0x25   : > { %330 = vst [vmem:[%s306_s4 + $0x1] sm:$0x1] (%p1056_p3), %v329_v17 }
  0x26 PF: > { %p765_p6 = scmp.ge.s32.totalorder %s1002_s13, 1  ;;  %p349_p7 = scmp.lt.s32.totalorder %s1002_s13, 3 }
  0x28   : > { %p350_p8 = pnand %p765_p6, %p349_p7 }
  0x29   : > { %s356_s5 = sand.u32 (!%p350_p8), 1, %s986_s9   ;;  %p768_p9 = scmp.ne.s32.totalorder (!%p350_p8), %s994_s11, 0 }
  0x2a   : > { %353 = sbr.rel (%p350_p8) target bundleno = 519 (0x207), region = 95  ;;  %s766_s6 = sshll.u32 (!%p350_p8), %s356_s5, 7 }
  0x2b   : > { %s767_s7 = sshll.u32 (!%p350_p8), %s356_s5, 1  ;;  %s1102_s8 = scalar_lea.vmem (!%p350_p8), [#allocation4], %s766_s6 }
  0x2c   : > { %s1104_s16 = scalar_lea.vmem (!%p350_p8), [#allocation5], %s767_s7 }
  0x2f   : > { %390 = sbr.rel (%p768_p9) target bundleno = 57 (0x39), region = 107 }
  0x34   : > { %vm391_vm0 = vcmask 253952   ;;  %vm394_vm1 = vcmask 0   ;;  %v1004_v18 = vmov 0.0  }
  0x35   : > { %392 = vst.msk [vmem:[#allocation2] sm:$0x1] %vm391_vm0, %v1004_v18 }
  0x36   : > { %393 = vst.msk [vmem:[#allocation2 + $0x1] sm:$0x1] %vm391_vm0, %v1004_v18 }
  0x37   : > { %395 = vst.msk [vmem:[#allocation3] sm:$0x1] %vm394_vm1, %v1004_v18 }
  0x38   : > { %396 = vst.msk [vmem:[#allocation3 + $0x1] sm:$0x1] %vm394_vm1, %v1004_v18 }
  0x39 PF: > { %v863_v19 = vld [vmem:[%s1102_s8 + $0x38] sm:$0xff]  ;;  %v862_v21 = vld [vmem:[%s1102_s8 + $0x30] sm:$0xff]  ;;  %v861_v23 = vld [vmem:[%s1102_s8 + $0x28] sm:$0xff]  ;;  %vm569_vm2 = vcmask 1040384   ;;  %vm578_vm3 = vcmask 0   ;;  %vm477_vm4 = vcmask 253952  }
  0x3a   : > { %v871_v20 = vld [vmem:[%s1102_s8 + $0x78] sm:$0xff]  ;;  %463 = vmatpush.bf16.msra.mxu0 %v863_v19  ;;  %v870_v22 = vld [vmem:[%s1102_s8 + $0x70] sm:$0xff]  ;;  %v869_v24 = vld [vmem:[%s1102_s8 + $0x68] sm:$0xff]  ;;  %p850_p10 = scmp.ne.s32.totalorder %s994_s11, 1 }
  0x3b   : > { %548 = vmatpush.bf16.msra.mxu1 %v871_v20  ;;  %v565_v25 = vld [vmem:[%s1104_s16] sm:$0x1]  ;;  %v566_v28 = vld [vmem:[%s1104_s16 + $0x1] sm:$0x1]  ;;  %v859_v32 = vld [vmem:[%s1102_s8 + $0x18] sm:$0xff] }
  0x3c   : > { %v567_v26 = vunpack.c.l.bf16 %v565_v25  ;;  %v860_v29 = vld [vmem:[%s1102_s8 + $0x20] sm:$0xff]  ;;  %v568_v31 = vunpack.c.l.bf16 %v566_v28  ;;  %v867_v33 = vld [vmem:[%s1102_s8 + $0x58] sm:$0xff]  ;;  %v858_v35 = vld [vmem:[%s1102_s8 + $0x10] sm:$0xff] }
  0x3d   : > { %v868_v30 = vld [vmem:[%s1102_s8 + $0x60] sm:$0xff]  ;;  %v866_v36 = vld [vmem:[%s1102_s8 + $0x50] sm:$0xff]  ;;  %v857_v37 = vld [vmem:[%s1102_s8 + $0x8] sm:$0xff] }
  0x3e   : > { %464 = vmatpush.bf16.msra.mxu0 %v862_v21  ;;  %v570_v27 = vsel %vm569_vm2, %v567_v26, 0.0  ;;  %v573_v34 = vsel %vm569_vm2, %v568_v31, 0.0  ;;  %v865_v38 = vld [vmem:[%s1102_s8 + $0x48] sm:$0xff]  ;;  %v856_v39 = vld [vmem:[%s1102_s8] sm:$0xff]  ;;  %v563_v43 = vld [vmem:[#allocation3] sm:$0x1] }
  0x3f   : > { %549 = vmatpush.bf16.msra.mxu1 %v870_v22  ;;  %571 = vadd.xlane.f32.xlu0 %v570_v27  ;;  %v864_v40 = vld [vmem:[%s1102_s8 + $0x40] sm:$0xff]  ;;  %v564_v46 = vld [vmem:[#allocation3 + $0x1] sm:$0x1]  ;;  %v397_v49 = vld [vmem:[#allocation2] sm:$0x1] }
  0x40   : > { %v398_v41 = vld [vmem:[%s1104_s16] sm:$0x1]  ;;  %v801_v42 = vld [vmem:[%s1104_s16 + $0x1] sm:$0x1]  ;;  %v480_v50 = vld [vmem:[#allocation2 + $0x1] sm:$0x1] }
  0x42   : > { %465 = vmatpush.bf16.msra.mxu0 %v861_v23 }
  0x43   : > { %550 = vmatpush.bf16.msra.mxu1 %v869_v24 }
  0x46   : > { %466 = vmatpush.bf16.msra.mxu0 %v860_v29 }
  0x47   : > { %551 = vmatpush.bf16.msra.mxu1 %v868_v30  ;;  %574 = vadd.xlane.f32.xlu0 %v573_v34 }
  0x4a   : > { %467 = vmatpush.bf16.msra.mxu0 %v859_v32 }
  0x4b   : > { %552 = vmatpush.bf16.msra.mxu1 %v867_v33 }
  0x4e   : > { %468 = vmatpush.bf16.msra.mxu0 %v858_v35 }
  0x4f   : > { %553 = vmatpush.bf16.msra.mxu1 %v866_v36 }
  0x52   : > { %469 = vmatpush.bf16.msra.mxu0 %v857_v37 }
  0x53   : > { %554 = vmatpush.bf16.msra.mxu1 %v865_v38 }
  0x56   : > { %470 = vmatpush.bf16.msra.mxu0 %v856_v39 }
  0x57   : > { %555 = vmatpush.bf16.msra.mxu1 %v864_v40 }
  0x59   : > { %471 = vmatmul.bf16.vlgmr.msra.gmra.mxu0 %v398_v41 }
  0x5a   : > { %556 = vmatmul.bf16.vlgmr.msra.gmra.mxu1 %v801_v42 }
  0xb2   : > { %v572_v44 = vpop.xlane.xlu0 %571 }
  0xb3   : > { %v576_v45 = vadd.f32 %v572_v44, %v563_v43 }
  0xb5   : > { %579 = vst.msk [vmem:[#allocation3] sm:$0x1] %vm578_vm3, %v576_v45 }
  0xba   : > { %v575_v47 = vpop.xlane.xlu0 %574 }
  0xbb   : > { %v577_v48 = vadd.f32 %v575_v47, %v564_v46 }
  0xbd   : > { %580 = vst.msk [vmem:[#allocation3 + $0x1] sm:$0x1] %vm578_vm3, %v577_v48 }
  0xd6   : > { %v472_v51 = vpop.f32.mrf.mxu0 }
  0xd7   : > { %v557_v52 = vpop.f32.mrf.mxu1  ;;  %v476_v53 = vadd.f32 %v472_v51, %v397_v49 }
  0xd8   : > { %v561_v54 = vadd.f32 %v557_v52, %v480_v50 }
  0xd9   : > { %478 = vst.msk [vmem:[#allocation2] sm:$0x1] %vm477_vm4, %v476_v53 }
  0xda   : > { %562 = vst.msk [vmem:[#allocation2 + $0x1] sm:$0x1] %vm477_vm4, %v561_v54 }
  0xdb   : > { %584 = sbr.rel (%p850_p10) target bundleno = 513 (0x201), region = 111 }
  0xde   : > { %v474_v55 = vpop.f32.mrf.mxu0 }
  0xdf   : > { %v559_v56 = vpop.f32.mrf.mxu1 }
  0xe0   : > { %v585_v57 = vld [vmem:[#allocation3] sm:$0x1]  ;;  %v586_v58 = vld [vmem:[#allocation3 + $0x1] sm:$0x1]  ;;  %v1005_v59 = vmov 0  }
  0xe1   : > { %923 = vset.pattern.permute.xlu0 %v1005_v59  ;;  %v587_v60 = vmax.f32 %v585_v57, 1e-09  ;;  %v588_v61 = vmax.f32 %v586_v58, 1e-09  ;;  %v589_v19 = vld [vmem:[#allocation2] sm:$0x1] }
  0xe2   : > { %v590_v24 = vld [vmem:[#allocation2 + $0x1] sm:$0x1] }
  0xe3   : > { %924 = vrcp.f32 %v587_v60  ;;  %v602_v1 = vand.u32 2147483648, %v587_v60  ;;  %vm596_vm5 = vweird.f32 %v587_v60  ;;  %v600_v4 = vand.u32 2147483647, %v587_v60 }
  0xe4   : > { %926 = vrcp.f32 %v588_v61  ;;  %vm610_vm9 = vweird.f32 %v588_v61  ;;  %v616_v10 = vand.u32 2147483648, %v588_v61  ;;  %v614_v13 = vand.u32 2147483647, %v588_v61 }
  0xe5   : > { %v603_v7 = vor.u32 1.1754944e-38, %v602_v1  ;;  %vm601_vm8 = vcmp.eq.f32.partialorder %v600_v4, 8.507059e+37 }
  0xe6   : > { %v617_v15 = vor.u32 1.1754944e-38, %v616_v10  ;;  %vm615_vm12 = vcmp.eq.f32.partialorder %v614_v13, 8.507059e+37 }
  0xe9   : > { %v925_v62 = vpop.eup %924 }
  0xea   : > { %v927_v63 = vpop.eup %926  ;;  %v592_v0 = vmul.f32 %v925_v62, %v587_v60  ;;  %vm597_vm6 = vweird.f32 %v925_v62 }
  0xeb   : > { %v606_v2 = vmul.f32 %v927_v63, %v588_v61  ;;  %vm598_vm7 = vmor %vm596_vm5, %vm597_vm6  ;;  %vm611_vm10 = vweird.f32 %v927_v63 }
  0xec   : > { %v593_v3 = vsub.f32 1.0, %v592_v0  ;;  %vm612_vm11 = vmor %vm610_vm9, %vm611_vm10 }
  0xed   : > { %v607_v5 = vsub.f32 1.0, %v606_v2 }
  0xee   : > { %v594_v6 = vmul.f32 %v925_v62, %v593_v3 }
  0xef   : > { %v608_v8 = vmul.f32 %v927_v63, %v607_v5 }
  0xf0   : > { %v595_v9 = vadd.f32 %v925_v62, %v594_v6 }
  0xf1   : > { %v609_v12 = vadd.f32 %v927_v63, %v608_v8 }
  0xf2   : > { %v599_v11 = vsel %vm598_vm7, %v925_v62, %v595_v9 }
  0xf3   : > { %v604_v14 = vsel %vm601_vm8, %v603_v7, %v599_v11  ;;  %v613_v16 = vsel %vm612_vm11, %v927_v63, %v609_v12 }
  0xf4   : > { %621 = vperm.xlu0 %923, %v604_v14   ;;  %v618_v17 = vsel %vm615_vm12, %v617_v15, %v613_v16 }
  0xfc   : > { %627 = vperm.xlu0 %923, %v618_v17  }
 0x166   : > { %v622_v18 = vpop.permute.xlu0 %621 }
 0x167   : > { %v624_v20 = vperm.slane %v622_v18, 0 }
 0x169   : > { %v631_v21 = vmul.f32 %v624_v20, %v589_v19 }
 0x16b   : > { %v633_v22 = vmul.f32 %v631_v21, %v631_v21 }
 0x16d   : > { %v635_v23 = vsel %vm477_vm4, %v633_v22, 0.0 }
 0x16e   : > { %636 = vadd.xlane.f32.xlu1 %v635_v23  ;;  %v628_v25 = vpop.permute.xlu0 %627 }
 0x16f   : > { %v630_v26 = vperm.slane %v628_v25, 0 }
 0x171   : > { %v632_v27 = vmul.f32 %v630_v26, %v590_v24 }
 0x173   : > { %v634_v28 = vmul.f32 %v632_v27, %v632_v27 }
 0x175   : > { %v638_v29 = vsel %vm477_vm4, %v634_v28, 0.0 }
 0x176   : > { %639 = vadd.xlane.f32.xlu1 %v638_v29 }
 0x1e1   : > { %v637_v30 = vpop.xlane.xlu1 %636 }
 0x1e2   : > { %v641_v31 = vmax.f32 %v637_v30, 1e-24 }
 0x1e4   : > { %928 = vrsqrt.f32 %v641_v31  ;;  %vm649_vm14 = vweird.f32 %v641_v31 }
 0x1e9   : > { %v640_v32 = vpop.xlane.xlu1 %639 }
 0x1ea   : > { %v929_v33 = vpop.eup %928  ;;  %v642_v34 = vmax.f32 %v640_v32, 1e-24 }
 0x1eb   : > { %v644_v35 = vmul.f32 %v929_v33, %v641_v31  ;;  %vm650_vm13 = vweird.f32 %v929_v33 }
 0x1ec   : > { %930 = vrsqrt.f32 %v642_v34  ;;  %vm651_vm15 = vmor %vm649_vm14, %vm650_vm13  ;;  %vm659_vm1 = vweird.f32 %v642_v34 }
 0x1ed   : > { %v645_v36 = vmul.f32 %v929_v33, %v644_v35 }
 0x1ef   : > { %v646_v37 = vmul.f32 0.5, %v645_v36 }
 0x1f1   : > { %v647_v38 = vsub.f32 1.5, %v646_v37 }
 0x1f2   : > { %v931_v39 = vpop.eup %930 }
 0x1f3   : > { %v648_v40 = vmul.f32 %v929_v33, %v647_v38  ;;  %v654_v41 = vmul.f32 %v931_v39, %v642_v34  ;;  %vm660_vm0 = vweird.f32 %v931_v39 }
 0x1f4   : > { %vm661_vm2 = vmor %vm659_vm1, %vm660_vm0 }
 0x1f5   : > { %v652_v42 = vsel %vm651_vm15, %v929_v33, %v648_v40  ;;  %v655_v43 = vmul.f32 %v931_v39, %v654_v41 }
 0x1f6   : > { %v663_v44 = vmul.f32 %v652_v42, %v631_v21 }
 0x1f7   : > { %v656_v45 = vmul.f32 0.5, %v655_v43 }
 0x1f8   : > { %665 = vst.msk [vmem:[#allocation6] sm:$0x1] %vm477_vm4, %v663_v44 }
 0x1f9   : > { %v657_v46 = vsub.f32 1.5, %v656_v45 }
 0x1fb   : > { %v658_v47 = vmul.f32 %v931_v39, %v657_v46 }
 0x1fd   : > { %v662_v48 = vsel %vm661_vm2, %v931_v39, %v658_v47 }
 0x1fe   : > { %v664_v49 = vmul.f32 %v662_v48, %v632_v27 }
 0x200   : > { %666 = vst.msk [vmem:[#allocation6 + $0x1] sm:$0x1] %vm477_vm4, %v664_v49 }
 0x201 PF: > { %p876_p11 = scmp.eq.s32.totalorder %s758_s14, 1  ;;  %s676_s17 = sshll.u32 %s1156_s2, 4  ;;  %s677_s17 = int_to_ptr.hbm [resolvable:$true] %s676_s17 }
 0x202   : > { %s1006_s18 = smov [#allocation6]   ;;  %s1007_s21 = smov 16  }
 0x203   : > { %s674_s20 = sshll.u32 %s1006_s18, 4  ;;  %s1008_s22 = smov 1   ;;  %s675_s20 = int_to_ptr.vmem [resolvable:$true] %s674_s20 }
 0x204   : > { %873 = dma.vmem_to_hbm [thread:$0]  (%p876_p11), %s675_s20, 32, %s677_s17, [#allocation7], %s1007_s21, %s1007_s21, %s1008_s22  }
 0x205   : > { %981 = dma.done.wait (%p876_p11), [#allocation7], 32  }
 0x206   : > { %983 = vsyncadd (%p876_p11), [#allocation7], 4294967264 }
 0x207 PF: > { %s13_s13 = sadd.s32 1, %s1002_s13   ;;  %s1158_s9 = smov %s990_s10 }
 0x208   : > { %p10_p12 = scmp.ge.s32.totalorder %s13_s13, 4   ;;  %s1159_s10 = smov %s1064_s19 }
 0x209   : > { %s1160_s11 = smov %s998_s12  ;;  %s1161_s12 = smov %s1163_s15 }
 0x20a   :  { %12 = sbr.rel (!%p10_p12) target bundleno = 3 (0x3), region = 155 }
 0x20f   :  { %693 = vsyncpa [#allocation7], 1 }
 0x210   :  { %695 = vsyncpa [#allocation7 + $0x1], 1 }

</bundles_post_ra>
